<compile_context>
chip_gen: v7x
topology: tpu7x:2x2x1
jax: 0.10.0
libtpu: 0.0.40
codegen_flags: <defaults>
</compile_context>

<pallas_src>
import jax
import jax.numpy as jnp
from jax.experimental import pallas as pl
from jax.experimental.pallas import tpu as pltpu


# ----------------------------- Pallas kernel ------------------------------ #

def _vgae_fused_kernel(adj_ref, x_ref, w1_ref, w2_ref, out_ref):
    f32 = jnp.float32
    bf16 = jnp.bfloat16
    n = adj_ref.shape[0]

    adj = adj_ref[...]                                        # f32 {0,1}

    # Identity from a 2-D iota comparison (kept minimal: compare + cast).
    rows = jax.lax.broadcasted_iota(jnp.int32, (n, n), 0)
    cols = jax.lax.broadcasted_iota(jnp.int32, (n, n), 1)
    eye = (rows == cols).astype(f32)

    # Degree / D^-1/2 computed in-kernel: lane reduce (XLU) + rsqrt (EUP),
    # both off the MXU critical path.
    deg = jnp.sum(adj, axis=1, keepdims=True) + 1.0           # (N, 1)
    d_col = jax.lax.rsqrt(deg)                                # (N, 1)
    # Row-vector copy of d without a transpose: sublane-reduce eye * d_col.
    d_row = jnp.sum(eye * d_col, axis=0, keepdims=True)       # (1, N)

    # A_hat = D^-1/2 (A + I) D^-1/2, VMEM-resident only, one bf16 cast.
    a_hat = ((adj + eye) * d_col * d_row).astype(bf16)

    # GCN layer 1: H1 = ReLU(A_hat @ (X @ W1))   (bf16 MXU inputs, f32 acc)
    xw1 = jnp.dot(x_ref[...], w1_ref[...], preferred_element_type=f32)
    h1 = jnp.maximum(
        jnp.dot(a_hat, xw1.astype(bf16), preferred_element_type=f32), 0.0)

    # GCN layer 2 + NonLinear('relu'): Z = ReLU(A_hat @ (H1 @ W2))
    hw2 = jnp.dot(h1.astype(bf16), w2_ref[...], preferred_element_type=f32)
    z = jnp.maximum(
        jnp.dot(a_hat, hw2.astype(bf16), preferred_element_type=f32), 0.0)

    # InnerProduct decoder: adj_logits = Z @ Z.T, contracting the feature
    # axis of both operands on the MXU (no transpose materialized).
    zb = z.astype(bf16)
    out_ref[...] = jax.lax.dot_general(
        zb, zb, dimension_numbers=(((1,), (1,)), ((), ())),
        preferred_element_type=f32)


# ------------------------------ VGAE wrapper ------------------------------ #

def glorot(key, shape):
    fan_in, fan_out = shape
    limit = jnp.sqrt(6.0 / (fan_in + fan_out))
    return jax.random.uniform(key, shape, jnp.float32, -limit, limit)


def init_vgae_params(key, n_feat, n_hidden, n_embed):
    k1, k2 = jax.random.split(key)
    return {
        "W1": glorot(k1, (n_feat, n_hidden)),   # GCN layer 1 weight (bias=False)
        "W2": glorot(k2, (n_hidden, n_embed)),  # GCN layer 2 weight (bias=False)
    }


def _round_up(x, m):
    return (x + m - 1) // m * m


def prepare_vgae_params(params, lane=128):
    """One-time prep: cast weights to bf16 and zero-pad columns to lane
    multiples.  Zero columns stay zero through ReLU and contribute 0 to
    Z @ Z.T, so the forward math is unchanged."""
    w1 = params["W1"].astype(jnp.bfloat16)
    w2 = params["W2"].astype(jnp.bfloat16)
    n_feat, n_hidden = w1.shape
    _, n_embed = w2.shape
    h_pad = _round_up(n_hidden, lane)
    e_pad = _round_up(n_embed, lane)
    w1p = jnp.zeros((n_feat, h_pad), jnp.bfloat16).at[:, :n_hidden].set(w1)
    w2p = jnp.zeros((h_pad, e_pad), jnp.bfloat16).at[:n_hidden, :n_embed].set(w2)
    return {"W1": w1p, "W2": w2p}


def vgae_forward(params, feats, adj):
    """VGAE forward: adj_logits = Z @ Z.T, Z = ReLU(encoder(feats, adj)).

    `params` are the bf16 lane-padded weights from prepare_vgae_params;
    `feats` may be bf16 (pre-cast) or f32.  The wrapper is a single fused
    pallas_call — degree normalization, both GCN layers, the ReLU and the
    inner-product decoder all run in one kernel with no HBM intermediates.
    """
    n = adj.shape[0]
    vmem = pl.BlockSpec(memory_space=pltpu.MemorySpace.VMEM)
    return pl.pallas_call(
        _vgae_fused_kernel,
        out_shape=jax.ShapeDtypeStruct((n, n), jnp.float32),
        in_specs=[vmem, vmem, vmem, vmem],
        out_specs=vmem,
    )(adj, feats, params["W1"], params["W2"])


# --------------------------------- main ----------------------------------- #

if __name__ == "__main__":
    N = 128        # number of nodes
    N_FEAT = 64    # input feature dim
    N_HIDDEN = 64  # encoder hidden dim
    N_EMBED = 32   # conf.gsl['n_embed']

    key = jax.random.PRNGKey(0)
    k_feat, k_adj, k_param = jax.random.split(key, 3)

    feats = jax.random.normal(k_feat, (N, N_FEAT), jnp.float32)
    # Symmetric random {0,1} adjacency (dense).
    a_rand = (jax.random.uniform(k_adj, (N, N)) < 0.05).astype(jnp.float32)
    adj = jnp.maximum(a_rand, a_rand.T)

    params = init_vgae_params(k_param, N_FEAT, N_HIDDEN, N_EMBED)

    # One-time prep outside the hot path: bf16 + lane-padded weights, bf16 feats.
    prepped = jax.tree_util.tree_map(jax.block_until_ready,
                                     prepare_vgae_params(params))
    feats_bf16 = jax.block_until_ready(feats.astype(jnp.bfloat16))

    fwd = jax.jit(vgae_forward)
    adj_logits = jax.block_until_ready(fwd(prepped, feats_bf16, adj))

    # Pure-JAX f32 reference of the same math.  The kernel uses bf16 MXU
    # inputs with f32 accumulation, so compare with a bf16-appropriate
    # tolerance.
    deg = jnp.sum(adj, axis=1) + 1.0
    d_inv = 1.0 / jnp.sqrt(deg)
    a_hat = (adj + jnp.eye(N, dtype=jnp.float32)) * d_inv[:, None] * d_inv[None, :]
    h1_ref = jnp.maximum(a_hat @ (feats @ params["W1"]), 0.0)
    z_ref = jnp.maximum(a_hat @ (h1_ref @ params["W2"]), 0.0)
    ref = z_ref @ z_ref.T

    assert adj_logits.shape == (N, N)
    assert jnp.allclose(adj_logits, ref, atol=5e-2, rtol=5e-2), (
        "max abs err", float(jnp.max(jnp.abs(adj_logits - ref))))

    print("KERNEL_OK")
</pallas_src>

<mosaic_0001>
module attributes {stable_mosaic.version = 11 : i64} {
  func.func @_vgae_fused_kernel(%arg0: memref<128x128xf32, #tpu.memory_space<vmem>>, %arg1: memref<128x64xbf16, #tpu.memory_space<vmem>>, %arg2: memref<64x128xbf16, #tpu.memory_space<vmem>>, %arg3: memref<128x128xbf16, #tpu.memory_space<vmem>>, %arg4: memref<128x128xf32, #tpu.memory_space<vmem>>) attributes {dimension_semantics = [], scalar_prefetch = 0 : i64, scratch_operands = 0 : i64, tpu.core_type = #tpu.core_type<tc>} {
    %c0 = arith.constant 0 : index
    %c0_0 = arith.constant 0 : index
    %0 = vector.load %arg0[%c0, %c0_0] : memref<128x128xf32, #tpu.memory_space<vmem>>, vector<128x128xf32>
    %1 = tpu.iota {dimensions = array<i32: 0>} : vector<128x128xi32>
    %2 = tpu.iota {dimensions = array<i32: 1>} : vector<128x128xi32>
    %3 = arith.cmpi eq, %1, %2 : vector<128x128xi32>
    %4 = arith.extui %3 : vector<128x128xi1> to vector<128x128xi32>
    %5 = arith.sitofp %4 : vector<128x128xi32> to vector<128x128xf32>
    %cst = arith.constant dense<0.000000e+00> : vector<128xf32>
    %6 = vector.multi_reduction <add>, %0, %cst [1] : vector<128x128xf32> to vector<128xf32>
    %7 = vector.shape_cast %6 : vector<128xf32> to vector<128x1xf32>
    %cst_1 = arith.constant 1.000000e+00 : f32
    %8 = vector.broadcast %cst_1 : f32 to vector<128x1xf32>
    %9 = arith.addf %7, %8 : vector<128x1xf32>
    %10 = math.rsqrt %9 : vector<128x1xf32>
    %11 = vector.broadcast %10 : vector<128x1xf32> to vector<128x128xf32>
    %12 = arith.mulf %5, %11 : vector<128x128xf32>
    %cst_2 = arith.constant dense<0.000000e+00> : vector<128xf32>
    %13 = vector.multi_reduction <add>, %12, %cst_2 [0] : vector<128x128xf32> to vector<128xf32>
    %14 = vector.shape_cast %13 : vector<128xf32> to vector<1x128xf32>
    %15 = arith.addf %0, %5 : vector<128x128xf32>
    %16 = vector.broadcast %10 : vector<128x1xf32> to vector<128x128xf32>
    %17 = arith.mulf %15, %16 : vector<128x128xf32>
    %18 = vector.broadcast %14 : vector<1x128xf32> to vector<128x128xf32>
    %19 = arith.mulf %17, %18 : vector<128x128xf32>
    %20 = arith.truncf %19 : vector<128x128xf32> to vector<128x128xbf16>
    %c0_3 = arith.constant 0 : index
    %c0_4 = arith.constant 0 : index
    %21 = vector.load %arg1[%c0_3, %c0_4] : memref<128x64xbf16, #tpu.memory_space<vmem>>, vector<128x64xbf16>
    %c0_5 = arith.constant 0 : index
    %c0_6 = arith.constant 0 : index
    %22 = vector.load %arg2[%c0_5, %c0_6] : memref<64x128xbf16, #tpu.memory_space<vmem>>, vector<64x128xbf16>
    %cst_7 = arith.constant dense<0.000000e+00> : vector<128x128xf32>
    %23 = tpu.matmul %21, %22, %cst_7 {dimension_numbers = #tpu.dot_dimension_numbers<[1], [0], [0], [1], [0, 0, 1, 1], [], []>} : vector<128x64xbf16>, vector<64x128xbf16>, vector<128x128xf32> -> vector<128x128xf32>
    %24 = arith.truncf %23 : vector<128x128xf32> to vector<128x128xbf16>
    %cst_8 = arith.constant dense<0.000000e+00> : vector<128x128xf32>
    %25 = tpu.matmul %20, %24, %cst_8 {dimension_numbers = #tpu.dot_dimension_numbers<[1], [0], [0], [1], [0, 0, 1, 1], [], []>} : vector<128x128xbf16>, vector<128x128xbf16>, vector<128x128xf32> -> vector<128x128xf32>
    %cst_9 = arith.constant 0.000000e+00 : f32
    %26 = vector.broadcast %cst_9 : f32 to vector<128x128xf32>
    %27 = arith.maximumf %25, %26 : vector<128x128xf32>
    %28 = arith.truncf %27 : vector<128x128xf32> to vector<128x128xbf16>
    %c0_10 = arith.constant 0 : index
    %c0_11 = arith.constant 0 : index
    %29 = vector.load %arg3[%c0_10, %c0_11] : memref<128x128xbf16, #tpu.memory_space<vmem>>, vector<128x128xbf16>
    %cst_12 = arith.constant dense<0.000000e+00> : vector<128x128xf32>
    %30 = tpu.matmul %28, %29, %cst_12 {dimension_numbers = #tpu.dot_dimension_numbers<[1], [0], [0], [1], [0, 0, 1, 1], [], []>} : vector<128x128xbf16>, vector<128x128xbf16>, vector<128x128xf32> -> vector<128x128xf32>
    %31 = arith.truncf %30 : vector<128x128xf32> to vector<128x128xbf16>
    %cst_13 = arith.constant dense<0.000000e+00> : vector<128x128xf32>
    %32 = tpu.matmul %20, %31, %cst_13 {dimension_numbers = #tpu.dot_dimension_numbers<[1], [0], [0], [1], [0, 0, 1, 1], [], []>} : vector<128x128xbf16>, vector<128x128xbf16>, vector<128x128xf32> -> vector<128x128xf32>
    %cst_14 = arith.constant 0.000000e+00 : f32
    %33 = vector.broadcast %cst_14 : f32 to vector<128x128xf32>
    %34 = arith.maximumf %32, %33 : vector<128x128xf32>
    %35 = arith.truncf %34 : vector<128x128xf32> to vector<128x128xbf16>
    %cst_15 = arith.constant dense<0.000000e+00> : vector<128x128xf32>
    %36 = tpu.matmul %35, %35, %cst_15 {dimension_numbers = #tpu.dot_dimension_numbers<[1], [1], [0], [0], [0, 0, 1, 0], [], []>} : vector<128x128xbf16>, vector<128x128xbf16>, vector<128x128xf32> -> vector<128x128xf32>
    %c0_16 = arith.constant 0 : index
    %c0_17 = arith.constant 0 : index
    %37 = vector.load %arg4[%c0_16, %c0_17] : memref<128x128xf32, #tpu.memory_space<vmem>>, vector<128x128xf32>
    tpu.vector_store %arg4[%c0_16, %c0_17], %36 {strides = array<i32>} : memref<128x128xf32, #tpu.memory_space<vmem>>, vector<128x128xf32>,
    return
  }
}

</mosaic_0001>

<bundles_post_ra>
// kernel: vgae_forward.1
= control target key start
LH: loop header
LB: loop body
LE: loop exit
PB: predicated region body
PF: predicated region fallthrough
CT: control target
= control target key end

     0   :  { %9 = vsyncpa [#allocation3], 0  ;;  %s1745_s0 = inlined_call_operand.hbm [shape: f32[128,128], index: 0, kind: input, shape index: {}]   ;;  %s1746_s1 = inlined_call_operand.vmem [shape: bf16[128,64], index: 1, kind: input, shape index: {}]   ;;  %s1747_s2 = inlined_call_operand.vmem [shape: bf16[64,128], index: 2, kind: input, shape index: {}]   ;;  %s1748_s3 = inlined_call_operand.vmem [shape: bf16[128,128], index: 3, kind: input, shape index: {}]   ;;  %s1749_s4 = inlined_call_operand.hbm [shape: f32[128,128], index: 4, kind: output, shape index: {}]  }
   0x1   :  { %10 = vsyncpa [#allocation4], 0  ;;  %s1409_s15 = smov [#allocation2]   ;;  %s1361_s19 = scalar_lea.hbm %s1745_s0, 2048 }
   0x2   :  { %s16_s16 = sshll.u32 %s1409_s15, 4  ;;  %p1362_p0 = scmp.ne.s32.totalorder %s1745_s0, %s1361_s19  ;;  %s17_s16 = int_to_ptr.vmem [resolvable:$true] %s16_s16 }
   0x3   :  { %p1365_p1 = scmp.lt.u32.totalorder %s1361_s19, %s1745_s0 }
   0x5   :  { %p1367_p2 = pnand %p1365_p1, %p1362_p0 }
   0x7   :  { %1370 = shalt.err (!%p1367_p2)
}
   0x8   :  { %s1371_s24 = scalar_lea.vmem %s17_s16, 2048  ;;  %p1376_p4 = scmp.lt.s32.totalorder %s17_s16, %s17_s16 }
   0x9   :  { %p1372_p3 = scmp.ne.s32.totalorder %s17_s16, %s1371_s24  ;;  %p1377_p5 = scmp.lt.s32.totalorder %s1371_s24, %s1371_s24 }
   0xb   :  { %p1378_p6 = por %p1377_p5, %p1376_p4 }
   0xd   :  { %p1379_p7 = pnand %p1378_p6, %p1372_p3 }
   0xf   :  { %1382 = shalt.err (!%p1379_p7)
}
  0x10   :  { %s1410_s25 = smov 128   ;;  %s1411_s26 = smov 8  }
  0x11   :  { %22 = dma.hbm_to_vmem [thread:$0]  %s1745_s0, 2048, %s17_s16, [#allocation3], %s1410_s25, %s1410_s25, %s1411_s26  }
  0x12   :  { %1405 = dma.done.wait [#allocation3], 2048  }
  0x13   :  { %1406 = vsyncadd [#allocation3], 4294965248  ;;  %v1309_v0 = vld [vmem:[%s1747_s2] sm:$0xff]   ;;  %v1310_v1 = vld [vmem:[%s1747_s2 + $0x8] sm:$0xff]   ;;  %vm361_vm0 = vcmask 523264   ;;  %v49_v28 = vlaneseq  ;;  %v1412_v49 = vmov 0.0  }
  0x14   :  { %1152 = vmatprep.subr.bf16.mxu1 %v1309_v0  ;;  %v1460_v2 = vld [vmem:[#allocation2] sm:$0xff]  ;;  %v1311_v3 = vld [vmem:[%s1747_s2 + $0x10] sm:$0xff]   ;;  %v1471_v6 = vld [vmem:[#allocation2 + $0x8] sm:$0xff] }
  0x15   :  { %1153 = vmatpush3.bf16.msra.mxu1 %v1309_v0  ;;  %116 = vadd.xlane.f32.xlu0 %v1460_v2  ;;  %v1313_v4 = vld [vmem:[%s1746_s1] sm:$0xff]   ;;  %v1469_v5 = vld [vmem:[#allocation2 + $0x10] sm:$0xff]  ;;  %v1475_v7 = vld [vmem:[#allocation2 + $0x18] sm:$0xff]  ;;  %v1546_v31 = vshrl.u32 %v49_v28, 7  ;;  %v1549_v36 = vand.u32 127, %v49_v28 }
  0x16   :  { %1154 = vmatprep.subr.bf16.mxu1 %v1310_v1  ;;  %120 = vadd.xlane.f32.xlu1 %v1469_v5  ;;  %v1312_v8 = vld [vmem:[%s1747_s2 + $0x18] sm:$0xff]   ;;  %v1481_v9 = vld [vmem:[#allocation2 + $0x20] sm:$0xff]  ;;  %v1484_v10 = vld [vmem:[#allocation2 + $0x28] sm:$0xff] }
  0x17   :  { %1160 = vmatprep.mubr.msk.bf16.mxu1 %vm361_vm0, %v1313_v4  ;;  %v1487_v11 = vld [vmem:[#allocation2 + $0x30] sm:$0xff]  ;;  %v1314_v12 = vld [vmem:[%s1746_s1 + $0x8] sm:$0xff]   ;;  %v1496_v14 = vld [vmem:[#allocation2 + $0x38] sm:$0xff]  ;;  %v52_v34 = vadd.s32 16, %v1546_v31  ;;  %v51_v38 = vadd.s32 8, %v1546_v31  ;;  %v53_v39 = vadd.s32 24, %v1546_v31  ;;  %vm68_vm2 = vcmp.eq.s32.totalorder %v1546_v31, %v1549_v36 }
  0x18   :  { %v1315_v13 = vld [vmem:[%s1746_s1 + $0x10] sm:$0xff]   ;;  %v1499_v15 = vld [vmem:[#allocation2 + $0x40] sm:$0xff]  ;;  %v1501_v16 = vld [vmem:[#allocation2 + $0x48] sm:$0xff]  ;;  %v54_v41 = vadd.s32 32, %v1546_v31  ;;  %v55_v43 = vadd.s32 40, %v1546_v31  ;;  %v56_v45 = vadd.s32 48, %v1546_v31 }
  0x19   :  { %1155 = vmatpush3.bf16.msra.mxu1 %v1310_v1  ;;  %118 = vadd.xlane.f32.xlu0 %v1471_v6  ;;  %v1506_v17 = vld [vmem:[#allocation2 + $0x50] sm:$0xff]  ;;  %v1316_v18 = vld [vmem:[%s1746_s1 + $0x18] sm:$0xff]   ;;  %v1317_v19 = vld [vmem:[%s1746_s1 + $0x20] sm:$0xff]   ;;  %vm70_vm1 = vcmp.eq.s32.totalorder %v52_v34, %v1549_v36  ;;  %vm69_vm3 = vcmp.eq.s32.totalorder %v51_v38, %v1549_v36  ;;  %vm71_vm4 = vcmp.eq.s32.totalorder %v53_v39, %v1549_v36  ;;  %v57_v47 = vadd.s32 56, %v1546_v31 }
  0x1a   :  { %1156 = vmatprep.subr.bf16.mxu1 %v1311_v3  ;;  %122 = vadd.xlane.f32.xlu1 %v1475_v7  ;;  %v1516_v20 = vld [vmem:[#allocation2 + $0x58] sm:$0xff]  ;;  %v1519_v21 = vld [vmem:[#allocation2 + $0x60] sm:$0xff]  ;;  %v1524_v22 = vld [vmem:[#allocation2 + $0x68] sm:$0xff]  ;;  %v1034_v50 = vsel %vm70_vm1, 1.0, %v1412_v49  ;;  %vm72_vm5 = vcmp.eq.s32.totalorder %v54_v41, %v1549_v36  ;;  %v1565_v52 = vsel %vm68_vm2, 1.0, %v1412_v49  ;;  %vm73_vm6 = vcmp.eq.s32.totalorder %v55_v43, %v1549_v36 }
  0x1b   :  { %v1527_v23 = vld [vmem:[#allocation2 + $0x70] sm:$0xff]  ;;  %v1318_v24 = vld [vmem:[%s1746_s1 + $0x28] sm:$0xff]   ;;  %v1536_v26 = vld [vmem:[#allocation2 + $0x78] sm:$0xff]  ;;  %v219_v53 = vadd.f32 %v1034_v50, %v1469_v5  ;;  %v1572_v56 = vsel %vm69_vm3, 1.0, %v1412_v49  ;;  %vm74_vm7 = vcmp.eq.s32.totalorder %v56_v45, %v1549_v36  ;;  %v1035_v58 = vsel %vm71_vm4, 1.0, %v1412_v49 }
  0x1c   :  { %v1319_v25 = vld [vmem:[%s1746_s1 + $0x30] sm:$0xff]   ;;  %v1320_v27 = vld [vmem:[%s1746_s1 + $0x38] sm:$0xff]   ;;  %v1036_v59 = vsel %vm72_vm5, 1.0, %v1412_v49  ;;  %vm75_vm8 = vcmp.eq.s32.totalorder %v57_v47, %v1549_v36  ;;  %v58_v60 = vadd.s32 64, %v1546_v31  ;;  %v1037_v63 = vsel %vm73_vm6, 1.0, %v1412_v49 }
  0x1d   :  { %1157 = vmatpush3.bf16.msra.mxu1 %v1311_v3  ;;  %124 = vadd.xlane.f32.xlu0 %v1481_v9  ;;  %v59_v0 = vadd.s32 72, %v1546_v31  ;;  %v220_v3 = vadd.f32 %v1035_v58, %v1475_v7  ;;  %v1038_v4 = vsel %vm74_vm7, 1.0, %v1412_v49  ;;  %v222_v34 = vadd.f32 %v1037_v63, %v1484_v10 }
  0x1e   :  { %1158 = vmatprep.subr.bf16.mxu1 %v1312_v8  ;;  %126 = vadd.xlane.f32.xlu1 %v1484_v10  ;;  %vm76_vm9 = vcmp.eq.s32.totalorder %v58_v60, %v1549_v36  ;;  %v223_v43 = vadd.f32 %v1038_v4, %v1487_v11 }
  0x1f   :  { %vm77_vm10 = vcmp.eq.s32.totalorder %v59_v0, %v1549_v36  ;;  %v1040_v41 = vsel %vm76_vm9, 1.0, %v1412_v49 }
  0x20   :  { %v225_v0 = vadd.f32 %v1040_v41, %v1499_v15 }
  0x21   :  { %1159 = vmatpush3.bf16.msra.mxu1 %v1312_v8  ;;  %128 = vadd.xlane.f32.xlu0 %v1487_v11  ;;  %v1323_v11 = vld [vmem:[%s1748_s3 + $0x10] sm:$0xff]  }
  0x22   :  { %130 = vadd.xlane.f32.xlu1 %v1496_v14 }
  0x24   :  { %1161 = vmatmul.mubr.msk.bf16.vlgmr.msra.gmra.mrb[0].mxu1 %vm361_vm0, %v1314_v12 }
  0x25   :  { %1164 = vmatprep.mubr.msk.bf16.mxu1 %vm361_vm0, %v1315_v13  ;;  %132 = vadd.xlane.f32.xlu0 %v1499_v15  ;;  %v1324_v15 = vld [vmem:[%s1748_s3 + $0x18] sm:$0xff]  }
  0x26   :  { %134 = vadd.xlane.f32.xlu1 %v1501_v16 }
  0x29   :  { %136 = vadd.xlane.f32.xlu0 %v1506_v17 }
  0x2a   :  { %138 = vadd.xlane.f32.xlu1 %v1516_v20 }
  0x2c   :  { %1165 = vmatmul.mubr.msk.bf16.gmra.mrb[4].mxu1 %vm361_vm0, %v1316_v18  ;;  %v1592_v18 = vsel %vm75_vm8, 1.0, %v1412_v49 }
  0x2d   :  { %1168 = vmatprep.mubr.msk.bf16.mxu1 %vm361_vm0, %v1317_v19  ;;  %140 = vadd.xlane.f32.xlu0 %v1519_v21  ;;  %v60_v19 = vadd.s32 80, %v1546_v31 }
  0x2e   :  { %142 = vadd.xlane.f32.xlu1 %v1524_v22 }
  0x2f   :  { %vm78_vm11 = vcmp.eq.s32.totalorder %v60_v19, %v1549_v36  ;;  %v63_v19 = vadd.s32 104, %v1546_v31 }
  0x30   :  { %v1042_v60 = vsel %vm78_vm11, 1.0, %v1412_v49 }
  0x31   :  { %144 = vadd.xlane.f32.xlu0 %v1527_v23  ;;  %vm81_vm14 = vcmp.eq.s32.totalorder %v63_v19, %v1549_v36 }
  0x32   :  { %146 = vadd.xlane.f32.xlu1 %v1536_v26 }
  0x34   :  { %1169 = vmatmul.mubr.msk.bf16.gmra.mrb[8].mxu1 %vm361_vm0, %v1318_v24 }
  0x35   :  { %1172 = vmatprep.mubr.msk.bf16.mxu1 %vm361_vm0, %v1319_v25  ;;  %v221_v25 = vadd.f32 %v1036_v59, %v1481_v9  ;;  %v1322_v9 = vld [vmem:[%s1748_s3 + $0x8] sm:$0xff]  }
  0x3c   :  { %1173 = vmatmul.mubr.msk.bf16.gmra.mrb[12].mxu1 %vm361_vm0, %v1320_v27 }
  0xa2   :  { %v117_v29 = vpop.xlane.xlu0 %116 }
  0xa3   :  { %v148_v30 = vadd.f32 1.0, %v117_v29  ;;  %v121_v32 = vpop.xlane.xlu1 %120 }
  0xa4   :  { %v150_v33 = vadd.f32 1.0, %v121_v32 }
  0xa5   :  { %1329 = vrsqrt.f32 %v148_v30  ;;  %v61_v30 = vadd.s32 88, %v1546_v31 }
  0xa6   :  { %v119_v35 = vpop.xlane.xlu0 %118  ;;  %1331 = vrsqrt.f32 %v150_v33  ;;  %v1321_v33 = vld [vmem:[%s1748_s3] sm:$0xff]  }
  0xa7   :  { %v149_v37 = vadd.f32 1.0, %v119_v35  ;;  %v123_v40 = vpop.xlane.xlu1 %122  ;;  %1208 = vmatprep.subr.bf16.mxu0 %v1321_v33  ;;  %vm79_vm12 = vcmp.eq.s32.totalorder %v61_v30, %v1549_v36  ;;  %v64_v30 = vadd.s32 112, %v1546_v31 }
  0xa8   :  { %v151_v42 = vadd.f32 1.0, %v123_v40  ;;  %1209 = vmatpush3.bf16.msra.mxu0 %v1321_v33  ;;  %v227_v33 = vadd.f32 %v1042_v60, %v1506_v17 }
  0xa9   :  { %1333 = vrsqrt.f32 %v149_v37  ;;  %1210 = vmatprep.subr.bf16.mxu0 %v1322_v9  ;;  %vm82_vm15 = vcmp.eq.s32.totalorder %v64_v30, %v1549_v36 }
  0xaa   :  { %v125_v44 = vpop.xlane.xlu0 %124  ;;  %1335 = vrsqrt.f32 %v151_v42 }
  0xab   :  { %v152_v46 = vadd.f32 1.0, %v125_v44  ;;  %v127_v48 = vpop.xlane.xlu1 %126 }
  0xac   :  { %v153_v51 = vadd.f32 1.0, %v127_v48  ;;  %v1041_v48 = vsel %vm77_vm10, 1.0, %v1412_v49  ;;  %1211 = vmatpush3.bf16.msra.mxu0 %v1322_v9 }
  0xad   :  { %1337 = vrsqrt.f32 %v152_v46  ;;  %1212 = vmatprep.subr.bf16.mxu0 %v1323_v11 }
  0xae   :  { %v129_v54 = vpop.xlane.xlu0 %128  ;;  %1339 = vrsqrt.f32 %v153_v51  ;;  %v224_v51 = vadd.f32 %v1592_v18, %v1496_v14 }
  0xaf   :  { %v1569_v55 = vpop.eup %1329  ;;  %v154_v57 = vadd.f32 1.0, %v129_v54  ;;  %v131_v61 = vpop.xlane.xlu1 %130 }
  0xb0   :  { %v1332_v62 = vpop.eup %1331  ;;  %v155_v1 = vadd.f32 1.0, %v131_v61  ;;  %v180_v5 = vmul.f32 %v1569_v55, %v1565_v52  ;;  %v62_v61 = vadd.s32 96, %v1546_v31  ;;  %1213 = vmatpush3.bf16.msra.mxu0 %v1323_v11 }
  0xb1   :  { %1341 = vrsqrt.f32 %v154_v57  ;;  %v1587_v8 = vmul.f32 %v1332_v62, %v219_v53  ;;  %v182_v7 = vmul.f32 %v1332_v62, %v1034_v50  ;;  %1214 = vmatprep.subr.bf16.mxu0 %v1324_v15 }
  0xb2   :  { %v133_v12 = vpop.xlane.xlu0 %132  ;;  %1343 = vrsqrt.f32 %v155_v1  ;;  %vm80_vm13 = vcmp.eq.s32.totalorder %v62_v61, %v1549_v36 }
  0xb3   :  { %v1589_v13 = vpop.eup %1333  ;;  %v156_v24 = vadd.f32 1.0, %v133_v12  ;;  %v135_v28 = vpop.xlane.xlu1 %134  ;;  %v1043_v12 = vsel %vm79_vm12, 1.0, %v1412_v49 }
  0xb4   :  { %v181_v27 = vmul.f32 %v1589_v13, %v1572_v56  ;;  %v1336_v29 = vpop.eup %1335  ;;  %v157_v32 = vadd.f32 1.0, %v135_v28  ;;  %v228_v17 = vadd.f32 %v1043_v12, %v1516_v20  ;;  %1215 = vmatpush3.bf16.msra.mxu0 %v1324_v15  ;;  %v1045_v20 = vsel %vm81_vm14, 1.0, %v1412_v49 }
  0xb5   :  { %1345 = vrsqrt.f32 %v156_v24  ;;  %v183_v37 = vmul.f32 %v1336_v29, %v1035_v58  ;;  %v1608_v38 = vmul.f32 %v1336_v29, %v220_v3 }
  0xb6   :  { %v196_v35 = vadd.f32 %v181_v27, %v180_v5  ;;  %v137_v39 = vpop.xlane.xlu0 %136  ;;  %1347 = vrsqrt.f32 %v157_v32 }
  0xb7   :  { %v1338_v40 = vpop.eup %1337  ;;  %v158_v42 = vadd.f32 1.0, %v137_v39  ;;  %v139_v10 = vpop.xlane.xlu1 %138 }
  0xb8   :  { %v197_v44 = vadd.f32 %v196_v35, %v182_v7  ;;  %v184_v45 = vmul.f32 %v1338_v40, %v1036_v59  ;;  %v1615_v46 = vmul.f32 %v1338_v40, %v221_v25  ;;  %v1340_v47 = vpop.eup %1339  ;;  %v159_v50 = vadd.f32 1.0, %v139_v10  ;;  %v1325_v40 = vld [vmem:[%s1748_s3 + $0x20] sm:$0xff]  }
  0xb9   :  { %1349 = vrsqrt.f32 %v158_v42  ;;  %v185_v54 = vmul.f32 %v1340_v47, %v1037_v63  ;;  %v1626_v58 = vmul.f32 %v1340_v47, %v222_v34  ;;  %1216 = vmatprep.subr.bf16.mxu0 %v1325_v40 }
  0xba   :  { %v198_v53 = vadd.f32 %v197_v44, %v183_v37  ;;  %v141_v57 = vpop.xlane.xlu0 %140  ;;  %1351 = vrsqrt.f32 %v159_v50  ;;  %1217 = vmatpush3.bf16.msra.mxu0 %v1325_v40 }
  0xbb   :  { %v1342_v59 = vpop.eup %1341  ;;  %v160_v62 = vadd.f32 1.0, %v141_v57  ;;  %v143_v5 = vpop.xlane.xlu1 %142 }
  0xbc   :  { %v199_v1 = vadd.f32 %v198_v53, %v184_v45  ;;  %v186_v3 = vmul.f32 %v1342_v59, %v1038_v4  ;;  %v1633_v14 = vmul.f32 %v1342_v59, %v223_v43  ;;  %v1344_v63 = vpop.eup %1343  ;;  %v161_v24 = vadd.f32 1.0, %v143_v5 }
  0xbd   :  { %1353 = vrsqrt.f32 %v160_v62  ;;  %v226_v4 = vadd.f32 %v1041_v48, %v1501_v16  ;;  %v187_v7 = vmul.f32 %v1344_v63, %v1592_v18  ;;  %v1644_v28 = vmul.f32 %v1344_v63, %v224_v51 }
  0xbe   :  { %v200_v25 = vadd.f32 %v199_v1, %v185_v54  ;;  %v145_v27 = vpop.xlane.xlu0 %144  ;;  %1355 = vrsqrt.f32 %v161_v24  ;;  %v65_v18 = vadd.s32 120, %v1546_v31  ;;  %v1044_v45 = vsel %vm80_vm13, 1.0, %v1412_v49 }
  0xbf   :  { %v1346_v29 = vpop.eup %1345  ;;  %v162_v32 = vadd.f32 1.0, %v145_v27  ;;  %v147_v35 = vpop.xlane.xlu1 %146  ;;  %v229_v31 = vadd.f32 %v1044_v45, %v1519_v21  ;;  %v230_v51 = vadd.f32 %v1045_v20, %v1524_v22  ;;  %v1046_v59 = vsel %vm82_vm15, 1.0, %v1412_v49 }
  0xc0   :  { %v201_v9 = vadd.f32 %v200_v25, %v186_v3  ;;  %v188_v34 = vmul.f32 %v1346_v29, %v1040_v41  ;;  %v1649_v37 = vmul.f32 %v1346_v29, %v225_v0  ;;  %v1348_v16 = vpop.eup %1347  ;;  %v163_v39 = vadd.f32 1.0, %v147_v35 }
  0xc1   :  { %1357 = vrsqrt.f32 %v162_v32  ;;  %v189_v41 = vmul.f32 %v1348_v16, %v1041_v48  ;;  %v1657_v43 = vmul.f32 %v1348_v16, %v226_v4  ;;  %vm83_vm0 = vcmp.eq.s32.totalorder %v65_v18, %v1549_v36  ;;  %v1326_v48 = vld [vmem:[%s1748_s3 + $0x28] sm:$0xff]  }
  0xc2   :  { %v202_v42 = vadd.f32 %v201_v9, %v187_v7  ;;  %1359 = vrsqrt.f32 %v163_v39  ;;  %v1047_v3 = vsel %vm83_vm0, 1.0, %v1412_v49  ;;  %1218 = vmatprep.subr.bf16.mxu0 %v1326_v48  ;;  %v217_v49 = vadd.f32 %v1565_v52, %v1460_v2 }
  0xc3   :  { %v1350_v44 = vpop.eup %1349  ;;  %v232_v22 = vadd.f32 %v1047_v3, %v1536_v26  ;;  %1219 = vmatpush3.bf16.msra.mxu0 %v1326_v48  ;;  %v218_v26 = vadd.f32 %v1572_v56, %v1471_v6 }
  0xc4   :  { %v203_v10 = vadd.f32 %v202_v42, %v188_v34  ;;  %v190_v47 = vmul.f32 %v1350_v44, %v1042_v60  ;;  %v243_v50 = vmul.f32 %v1350_v44, %v227_v33  ;;  %v1352_v11 = vpop.eup %1351  ;;  %v231_v60 = vadd.f32 %v1046_v59, %v1527_v23 }
  0xc5   :  { %v191_v21 = vmul.f32 %v1352_v11, %v1043_v12  ;;  %v244_v54 = vmul.f32 %v1352_v11, %v228_v17  ;;  %v233_v35 = vmul.f32 %v1569_v55, %v217_v49  ;;  %v234_v16 = vmul.f32 %v1589_v13, %v218_v26 }
  0xc6   :  { %v204_v53 = vadd.f32 %v203_v10, %v189_v41 }
  0xc7   :  { %v1354_v57 = vpop.eup %1353 }
  0xc8   :  { %v205_v61 = vadd.f32 %v204_v53, %v190_v47  ;;  %v192_v62 = vmul.f32 %v1354_v57, %v1044_v45  ;;  %v245_v0 = vmul.f32 %v1354_v57, %v229_v31  ;;  %v1356_v1 = vpop.eup %1355 }
  0xc9   :  { %v193_v63 = vmul.f32 %v1356_v1, %v1045_v20  ;;  %v246_v12 = vmul.f32 %v1356_v1, %v230_v51 }
  0xca   :  { %v206_v5 = vadd.f32 %v205_v61, %v191_v21 }
  0xcb   :  { %v1358_v19 = vpop.eup %1357 }
  0xcc   :  { %v207_v24 = vadd.f32 %v206_v5, %v192_v62  ;;  %v194_v15 = vmul.f32 %v1358_v19, %v1046_v59  ;;  %v247_v36 = vmul.f32 %v1358_v19, %v231_v60  ;;  %v1360_v4 = vpop.eup %1359 }
  0xcd   :  { %v195_v25 = vmul.f32 %v1360_v4, %v1047_v3  ;;  %v248_v7 = vmul.f32 %v1360_v4, %v232_v22  ;;  %v1327_v4 = vld [vmem:[%s1748_s3 + $0x30] sm:$0xff]  }
  0xce   :  { %v208_v23 = vadd.f32 %v207_v24, %v193_v63  ;;  %1220 = vmatprep.subr.bf16.mxu0 %v1327_v4 }
  0xcf   :  { %1221 = vmatpush3.bf16.msra.mxu0 %v1327_v4 }
  0xd0   :  { %v209_v27 = vadd.f32 %v208_v23, %v194_v15  ;;  %v1328_v23 = vld [vmem:[%s1748_s3 + $0x38] sm:$0xff]   ;;  %s1413_s3 = smov [#allocation5]  }
  0xd1   :  { %1222 = vmatprep.subr.bf16.mxu0 %v1328_v23  ;;  %s1020_s14 = sshll.u32 %s1413_s3, 4  ;;  %s1021_s14 = int_to_ptr.vmem [resolvable:$true] %s1020_s14 }
  0xd2   :  { %v210_v29 = vadd.f32 %v209_v27, %v195_v25  ;;  %s1383_s15 = scalar_lea.vmem %s1021_s14, 2048  ;;  %p1388_p9 = scmp.lt.s32.totalorder %s1021_s14, %s1021_s14 }
  0xd3   :  { %1223 = vmatpush3.bf16.msra.mxu0 %v1328_v23  ;;  %p1384_p8 = scmp.ne.s32.totalorder %s1021_s14, %s1383_s15  ;;  %p1389_p10 = scmp.lt.s32.totalorder %s1383_s15, %s1383_s15 }
  0xd4   :  { %v211_v30 = vrot.slane %v210_v29, 4 }
  0xd5   :  { %p1390_p11 = por %p1389_p10, %p1388_p9 }
  0xd6   :  { %v212_v32 = vadd.f32 %v211_v30, %v210_v29 }
  0xd7   :  { %p1391_p12 = pnand %p1390_p11, %p1384_p8 }
  0xd8   :  { %v213_v33 = vrot.slane %v212_v32, 2 }
  0xda   :  { %v214_v9 = vadd.f32 %v213_v33, %v212_v32 }
  0xdc   :  { %v215_v34 = vrot.slane %v214_v9, 1 }
  0xde   :  { %v216_v18 = vadd.f32 %v215_v34, %v214_v9 }
  0xe0   :  { %v249_v39 = vmul.f32 %v233_v35, %v216_v18  ;;  %v250_v40 = vmul.f32 %v234_v16, %v216_v18  ;;  %v251_v17 = vmul.f32 %v1587_v8, %v216_v18  ;;  %v252_v42 = vmul.f32 %v1608_v38, %v216_v18 }
  0xe1   :  { %v253_v41 = vmul.f32 %v1615_v46, %v216_v18  ;;  %v254_v2 = vmul.f32 %v1626_v58, %v216_v18  ;;  %v255_v6 = vmul.f32 %v1633_v14, %v216_v18  ;;  %v256_v52 = vmul.f32 %v1644_v28, %v216_v18 }
  0xe2   :  { %v1690_v56 = vpack.c.bf16 %v250_v40, %v249_v39  ;;  %v1692_v55 = vpack.c.bf16 %v252_v42, %v251_v17  ;;  %v257_v13 = vmul.f32 %v1649_v37, %v216_v18  ;;  %v258_v44 = vmul.f32 %v1657_v43, %v216_v18 }
  0xe3   :  { %v1696_v45 = vpack.c.bf16 %v254_v2, %v253_v41  ;;  %v1698_v8 = vpack.c.bf16 %v256_v52, %v255_v6  ;;  %v259_v38 = vmul.f32 %v243_v50, %v216_v18  ;;  %v260_v46 = vmul.f32 %v244_v54, %v216_v18 }
  0xe4   :  { %1192 = vmatprep.mubr.bf16.mxu1 %v1690_v56  ;;  %v1701_v58 = vpack.c.bf16 %v258_v44, %v257_v13  ;;  %v261_v14 = vmul.f32 %v245_v0, %v216_v18  ;;  %v262_v28 = vmul.f32 %v246_v12, %v216_v18  ;;  %v263_v31 = vmul.f32 %v247_v36, %v216_v18 }
  0xe5   :  { %v1703_v10 = vpack.c.bf16 %v260_v46, %v259_v38  ;;  %v264_v47 = vmul.f32 %v248_v7, %v216_v18 }
  0xe6   :  { %v1705_v11 = vpack.c.bf16 %v262_v28, %v261_v14 }
  0xe7   :  { %v1707_v37 = vpack.c.bf16 %v264_v47, %v263_v31 }
  0xf7   :  { %v1162_v43 = vpop.f32.mrb[0].mxu1 }
  0xf8   :  { %v420_v20 = vpop.f32.mrb[1].mxu1 }
  0xf9   :  { %v1163_v48 = vpop.f32.mrb[2].mxu1 }
  0xfa   :  { %v484_v51 = vpack.c.bf16 %v1163_v48, %v1162_v43  ;;  %v423_v50 = vpop.f32.mrb[3].mxu1 }
  0xfb   :  { %v483_v53 = vpack.c.bf16 %v423_v50, %v420_v20 }
  0xfd   :  { %1176 = vmatprep.subr.bf16.mxu1 %v483_v53 }
  0xfe   :  { %1177 = vmatpush3.bf16.msra.mxu1 %v483_v53 }
  0xff   :  { %v1166_v21 = vpop.f32.mrb[4].mxu1  ;;  %1178 = vmatprep.subr.bf16.mxu1 %v484_v51 }
 0x100   :  { %v436_v54 = vpop.f32.mrb[5].mxu1 }
 0x101   :  { %v1167_v57 = vpop.f32.mrb[6].mxu1 }
 0x102   :  { %v486_v59 = vpack.c.bf16 %v1167_v57, %v1166_v21  ;;  %v439_v60 = vpop.f32.mrb[7].mxu1  ;;  %1179 = vmatpush3.bf16.msra.mxu1 %v484_v51 }
 0x103   :  { %v485_v61 = vpack.c.bf16 %v439_v60, %v436_v54 }
 0x105   :  { %1180 = vmatprep.subr.bf16.mxu1 %v485_v61 }
 0x106   :  { %1181 = vmatpush3.bf16.msra.mxu1 %v485_v61 }
 0x107   :  { %v1170_v62 = vpop.f32.mrb[8].mxu1  ;;  %1182 = vmatprep.subr.bf16.mxu1 %v486_v59 }
 0x108   :  { %v452_v0 = vpop.f32.mrb[9].mxu1 }
 0x109   :  { %v1171_v1 = vpop.f32.mrb[10].mxu1 }
 0x10a   :  { %v488_v3 = vpack.c.bf16 %v1171_v1, %v1170_v62  ;;  %v455_v22 = vpop.f32.mrb[11].mxu1  ;;  %1183 = vmatpush3.bf16.msra.mxu1 %v486_v59 }
 0x10b   :  { %v487_v5 = vpack.c.bf16 %v455_v22, %v452_v0 }
 0x10d   :  { %1184 = vmatprep.subr.bf16.mxu1 %v487_v5 }
 0x10e   :  { %1185 = vmatpush3.bf16.msra.mxu1 %v487_v5 }
 0x10f   :  { %v1174_v63 = vpop.f32.mrb[12].mxu1  ;;  %1186 = vmatprep.subr.bf16.mxu1 %v488_v3 }
 0x110   :  { %v468_v12 = vpop.f32.mrb[13].mxu1 }
 0x111   :  { %v1175_v19 = vpop.f32.mrb[14].mxu1 }
 0x112   :  { %v490_v24 = vpack.c.bf16 %v1175_v19, %v1174_v63  ;;  %v471_v15 = vpop.f32.mrb[15].mxu1  ;;  %1187 = vmatpush3.bf16.msra.mxu1 %v488_v3 }
 0x113   :  { %v489_v36 = vpack.c.bf16 %v471_v15, %v468_v12 }
 0x115   :  { %1188 = vmatprep.subr.bf16.mxu1 %v489_v36 }
 0x116   :  { %1189 = vmatpush3.bf16.msra.mxu1 %v489_v36 }
 0x117   :  { %1190 = vmatprep.subr.bf16.mxu1 %v490_v24 }
 0x11a   :  { %1191 = vmatpush3.bf16.msra.mxu1 %v490_v24 }
 0x11d   :  { %1193 = vmatmul.mubr.bf16.vlgmr.msra.gmra.mrb[16].mxu1 %v1692_v55 }
 0x11e   :  { %1196 = vmatprep.mubr.bf16.mxu1 %v1696_v45 }
 0x125   :  { %1197 = vmatmul.mubr.bf16.gmra.mrb[20].mxu1 %v1698_v8 }
 0x126   :  { %1200 = vmatprep.mubr.bf16.mxu1 %v1701_v58 }
 0x12d   :  { %1201 = vmatmul.mubr.bf16.gmra.mrb[24].mxu1 %v1703_v10 }
 0x12e   :  { %1204 = vmatprep.mubr.bf16.mxu1 %v1705_v11 }
 0x135   :  { %1205 = vmatmul.mubr.bf16.gmra.mrb[28].mxu1 %v1707_v37 }
 0x136   :  { %1256 = vmatprep.mubr.bf16.mxu1 %v1690_v56 }
 0x1f0   :  { %v1194_v25 = vpop.f32.mrb[16].mxu1 }
 0x1f1   :  { %v525_v7 = vpop.f32.mrb[17].mxu1  ;;  %v590_v29 = vmax.f32 %v1194_v25, 0.0 }
 0x1f2   :  { %v1195_v27 = vpop.f32.mrb[18].mxu1  ;;  %v588_v49 = vmax.f32 %v525_v7, 0.0 }
 0x1f3   :  { %v591_v30 = vmax.f32 %v1195_v27, 0.0  ;;  %v528_v32 = vpop.f32.mrb[19].mxu1 }
 0x1f4   :  { %v589_v26 = vmax.f32 %v528_v32, 0.0 }
 0x1f5   :  { %v605_v33 = vpack.c.bf16 %v591_v30, %v590_v29 }
 0x1f6   :  { %v604_v9 = vpack.c.bf16 %v589_v26, %v588_v49 }
 0x1f8   :  { %v1198_v34 = vpop.f32.mrb[20].mxu1  ;;  %1224 = vmatprep.mubr.bf16.mxu0 %v604_v9 }
 0x1f9   :  { %v541_v35 = vpop.f32.mrb[21].mxu1  ;;  %1225 = vmatmul.mubr.bf16.vlgmr.msra.gmra.mrb[0].mxu0 %v605_v33  ;;  %v594_v18 = vmax.f32 %v1198_v34, 0.0 }
 0x1fa   :  { %v1199_v16 = vpop.f32.mrb[22].mxu1  ;;  %v592_v17 = vmax.f32 %v541_v35, 0.0 }
 0x1fb   :  { %v595_v39 = vmax.f32 %v1199_v16, 0.0  ;;  %v544_v40 = vpop.f32.mrb[23].mxu1 }
 0x1fc   :  { %v593_v42 = vmax.f32 %v544_v40, 0.0 }
 0x1fd   :  { %v607_v41 = vpack.c.bf16 %v595_v39, %v594_v18 }
 0x1fe   :  { %v606_v2 = vpack.c.bf16 %v593_v42, %v592_v17 }
 0x200   :  { %v1202_v6 = vpop.f32.mrb[24].mxu1  ;;  %1228 = vmatprep.mubr.bf16.mxu0 %v606_v2 }
 0x201   :  { %v557_v52 = vpop.f32.mrb[25].mxu1  ;;  %1229 = vmatmul.mubr.bf16.gmra.mrb[4].mxu0 %v607_v41  ;;  %v598_v13 = vmax.f32 %v1202_v6, 0.0 }
 0x202   :  { %v1203_v56 = vpop.f32.mrb[26].mxu1  ;;  %v596_v46 = vmax.f32 %v557_v52, 0.0 }
 0x203   :  { %v599_v44 = vmax.f32 %v1203_v56, 0.0  ;;  %v560_v38 = vpop.f32.mrb[27].mxu1 }
 0x204   :  { %v597_v14 = vmax.f32 %v560_v38, 0.0 }
 0x205   :  { %v609_v28 = vpack.c.bf16 %v599_v44, %v598_v13 }
 0x206   :  { %v608_v31 = vpack.c.bf16 %v597_v14, %v596_v46 }
 0x208   :  { %v1206_v47 = vpop.f32.mrb[28].mxu1  ;;  %1232 = vmatprep.mubr.bf16.mxu0 %v608_v31 }
 0x209   :  { %v573_v43 = vpop.f32.mrb[29].mxu1  ;;  %1233 = vmatmul.mubr.bf16.gmra.mrb[8].mxu0 %v609_v28  ;;  %v602_v48 = vmax.f32 %v1206_v47, 0.0 }
 0x20a   :  { %v1207_v20 = vpop.f32.mrb[30].mxu1  ;;  %v600_v53 = vmax.f32 %v573_v43, 0.0 }
 0x20b   :  { %v603_v51 = vmax.f32 %v1207_v20, 0.0  ;;  %v576_v50 = vpop.f32.mrb[31].mxu1 }
 0x20c   :  { %v601_v21 = vmax.f32 %v576_v50, 0.0 }
 0x20d   :  { %v611_v54 = vpack.c.bf16 %v603_v51, %v602_v48 }
 0x20e   :  { %v610_v57 = vpack.c.bf16 %v601_v21, %v600_v53 }
 0x210   :  { %1236 = vmatprep.mubr.bf16.mxu0 %v610_v57 }
 0x211   :  { %1237 = vmatmul.mubr.bf16.gmra.mrb[12].mxu0 %v611_v54 }
 0x2cc   :  { %v1226_v59 = vpop.f32.mrb[0].mxu0 }
 0x2cd   :  { %v710_v60 = vpop.f32.mrb[1].mxu0 }
 0x2ce   :  { %v1227_v61 = vpop.f32.mrb[2].mxu0 }
 0x2cf   :  { %v774_v62 = vpack.c.bf16 %v1227_v61, %v1226_v59  ;;  %v713_v0 = vpop.f32.mrb[3].mxu0 }
 0x2d0   :  { %v773_v1 = vpack.c.bf16 %v713_v0, %v710_v60 }
 0x2d2   :  { %1240 = vmatprep.subr.bf16.mxu1 %v773_v1 }
 0x2d3   :  { %1241 = vmatpush3.bf16.msra.mxu1 %v773_v1 }
 0x2d4   :  { %v1230_v3 = vpop.f32.mrb[4].mxu0  ;;  %1242 = vmatprep.subr.bf16.mxu1 %v774_v62 }
 0x2d5   :  { %v726_v22 = vpop.f32.mrb[5].mxu0 }
 0x2d6   :  { %v1231_v5 = vpop.f32.mrb[6].mxu0 }
 0x2d7   :  { %v776_v63 = vpack.c.bf16 %v1231_v5, %v1230_v3  ;;  %v729_v12 = vpop.f32.mrb[7].mxu0  ;;  %1243 = vmatpush3.bf16.msra.mxu1 %v774_v62 }
 0x2d8   :  { %v775_v19 = vpack.c.bf16 %v729_v12, %v726_v22 }
 0x2da   :  { %1244 = vmatprep.subr.bf16.mxu1 %v775_v19 }
 0x2db   :  { %1245 = vmatpush3.bf16.msra.mxu1 %v775_v19 }
 0x2dc   :  { %v1234_v24 = vpop.f32.mrb[8].mxu0  ;;  %1246 = vmatprep.subr.bf16.mxu1 %v776_v63 }
 0x2dd   :  { %v742_v15 = vpop.f32.mrb[9].mxu0 }
 0x2de   :  { %v1235_v36 = vpop.f32.mrb[10].mxu0 }
 0x2df   :  { %v778_v4 = vpack.c.bf16 %v1235_v36, %v1234_v24  ;;  %v745_v23 = vpop.f32.mrb[11].mxu0  ;;  %1247 = vmatpush3.bf16.msra.mxu1 %v776_v63 }
 0x2e0   :  { %v777_v25 = vpack.c.bf16 %v745_v23, %v742_v15 }
 0x2e2   :  { %1248 = vmatprep.subr.bf16.mxu1 %v777_v25 }
 0x2e3   :  { %1249 = vmatpush3.bf16.msra.mxu1 %v777_v25 }
 0x2e4   :  { %v1238_v7 = vpop.f32.mrb[12].mxu0  ;;  %1250 = vmatprep.subr.bf16.mxu1 %v778_v4 }
 0x2e5   :  { %v758_v27 = vpop.f32.mrb[13].mxu0 }
 0x2e6   :  { %v1239_v29 = vpop.f32.mrb[14].mxu0 }
 0x2e7   :  { %v780_v30 = vpack.c.bf16 %v1239_v29, %v1238_v7  ;;  %v761_v32 = vpop.f32.mrb[15].mxu0  ;;  %1251 = vmatpush3.bf16.msra.mxu1 %v778_v4 }
 0x2e8   :  { %v779_v49 = vpack.c.bf16 %v761_v32, %v758_v27 }
 0x2ea   :  { %1252 = vmatprep.subr.bf16.mxu1 %v779_v49 }
 0x2eb   :  { %1253 = vmatpush3.bf16.msra.mxu1 %v779_v49 }
 0x2ec   :  { %1254 = vmatprep.subr.bf16.mxu1 %v780_v30 }
 0x2ef   :  { %1255 = vmatpush3.bf16.msra.mxu1 %v780_v30 }
 0x2f2   :  { %1257 = vmatmul.mubr.bf16.vlgmr.msra.gmra.mrb[32].mxu1 %v1692_v55 }
 0x2f3   :  { %1260 = vmatprep.mubr.bf16.mxu1 %v1696_v45 }
 0x2fa   :  { %1261 = vmatmul.mubr.bf16.gmra.mrb[36].mxu1 %v1698_v8 }
 0x2fb   :  { %1264 = vmatprep.mubr.bf16.mxu1 %v1701_v58 }
 0x302   :  { %1265 = vmatmul.mubr.bf16.gmra.mrb[40].mxu1 %v1703_v10 }
 0x303   :  { %1268 = vmatprep.mubr.bf16.mxu1 %v1705_v11 }
 0x30a   :  { %1269 = vmatmul.mubr.bf16.gmra.mrb[44].mxu1 %v1707_v37 }
 0x3c5   :  { %v1258_v26 = vpop.f32.mrb[32].mxu1 }
 0x3c6   :  { %v815_v33 = vpop.f32.mrb[33].mxu1  ;;  %v880_v34 = vmax.f32 %v1258_v26, 0.0 }
 0x3c7   :  { %v1259_v9 = vpop.f32.mrb[34].mxu1  ;;  %v878_v18 = vmax.f32 %v815_v33, 0.0 }
 0x3c8   :  { %v881_v35 = vmax.f32 %v1259_v9, 0.0  ;;  %v818_v16 = vpop.f32.mrb[35].mxu1 }
 0x3c9   :  { %v879_v55 = vmax.f32 %v818_v16, 0.0 }
 0x3ca   :  { %v895_v39 = vpack.c.bf16 %v881_v35, %v880_v34 }
 0x3cb   :  { %v894_v45 = vpack.c.bf16 %v879_v55, %v878_v18 }
 0x3cd   :  { %v1262_v40 = vpop.f32.mrb[36].mxu1  ;;  %1272 = vmatprep.subr.bf16.mxu0 %v894_v45  ;;  %1288 = vmatprep.mubr.bf16.mxu0 %v894_v45 }
 0x3ce   :  { %v831_v8 = vpop.f32.mrb[37].mxu1  ;;  %1273 = vmatpush3.bf16.xpose.msra.mxu0 %v894_v45  ;;  %v884_v10 = vmax.f32 %v1262_v40, 0.0 }
 0x3cf   :  { %v1263_v58 = vpop.f32.mrb[38].mxu1  ;;  %1274 = vmatprep.subr.bf16.mxu0 %v895_v39  ;;  %v882_v17 = vmax.f32 %v831_v8, 0.0 }
 0x3d0   :  { %v885_v11 = vmax.f32 %v1263_v58, 0.0  ;;  %v834_v37 = vpop.f32.mrb[39].mxu1 }
 0x3d1   :  { %v883_v42 = vmax.f32 %v834_v37, 0.0 }
 0x3d2   :  { %v897_v41 = vpack.c.bf16 %v885_v11, %v884_v10 }
 0x3d3   :  { %v896_v2 = vpack.c.bf16 %v883_v42, %v882_v17 }
 0x3d5   :  { %v1266_v6 = vpop.f32.mrb[40].mxu1 }
 0x3d6   :  { %v847_v52 = vpop.f32.mrb[41].mxu1  ;;  %1275 = vmatpush3.bf16.xpose.msra.mxu0 %v895_v39  ;;  %v888_v13 = vmax.f32 %v1266_v6, 0.0 }
 0x3d7   :  { %v1267_v56 = vpop.f32.mrb[42].mxu1  ;;  %1276 = vmatprep.subr.bf16.mxu0 %v896_v2  ;;  %v886_v46 = vmax.f32 %v847_v52, 0.0 }
 0x3d8   :  { %v889_v44 = vmax.f32 %v1267_v56, 0.0  ;;  %v850_v38 = vpop.f32.mrb[43].mxu1 }
 0x3d9   :  { %v887_v14 = vmax.f32 %v850_v38, 0.0 }
 0x3da   :  { %v899_v28 = vpack.c.bf16 %v889_v44, %v888_v13 }
 0x3db   :  { %v898_v31 = vpack.c.bf16 %v887_v14, %v886_v46 }
 0x3dd   :  { %v1270_v47 = vpop.f32.mrb[44].mxu1 }
 0x3de   :  { %v863_v43 = vpop.f32.mrb[45].mxu1  ;;  %1277 = vmatpush3.bf16.xpose.msra.mxu0 %v896_v2  ;;  %v892_v48 = vmax.f32 %v1270_v47, 0.0 }
 0x3df   :  { %v1271_v20 = vpop.f32.mrb[46].mxu1  ;;  %1278 = vmatprep.subr.bf16.mxu0 %v897_v41  ;;  %v890_v53 = vmax.f32 %v863_v43, 0.0 }
 0x3e0   :  { %v893_v51 = vmax.f32 %v1271_v20, 0.0  ;;  %v866_v50 = vpop.f32.mrb[47].mxu1 }
 0x3e1   :  { %v891_v21 = vmax.f32 %v866_v50, 0.0 }
 0x3e2   :  { %v901_v54 = vpack.c.bf16 %v893_v51, %v892_v48 }
 0x3e3   :  { %v900_v57 = vpack.c.bf16 %v891_v21, %v890_v53 }
 0x3e6   :  { %1279 = vmatpush3.bf16.xpose.msra.mxu0 %v897_v41 }
 0x3e7   :  { %1280 = vmatprep.subr.bf16.mxu0 %v898_v31 }
 0x3ee   :  { %1281 = vmatpush3.bf16.xpose.msra.mxu0 %v898_v31 }
 0x3ef   :  { %1282 = vmatprep.subr.bf16.mxu0 %v899_v28 }
 0x3f6   :  { %1283 = vmatpush3.bf16.xpose.msra.mxu0 %v899_v28 }
 0x3f7   :  { %1284 = vmatprep.subr.bf16.mxu0 %v900_v57 }
 0x3fe   :  { %1285 = vmatpush3.bf16.xpose.msra.mxu0 %v900_v57 }
 0x3ff   :  { %1286 = vmatprep.subr.bf16.mxu0 %v901_v54 }
 0x406   :  { %1287 = vmatpush3.bf16.xpose.msra.mxu0 %v901_v54 }
 0x40d   :  { %1289 = vmatmul.mubr.bf16.vlgmr.msra.gmra.mrb[16].mxu0 %v895_v39 }
 0x40e   :  { %1292 = vmatprep.mubr.bf16.mxu0 %v896_v2 }
 0x415   :  { %1293 = vmatmul.mubr.bf16.gmra.mrb[20].mxu0 %v897_v41 }
 0x416   :  { %1296 = vmatprep.mubr.bf16.mxu0 %v898_v31 }
 0x41d   :  { %1297 = vmatmul.mubr.bf16.gmra.mrb[24].mxu0 %v899_v28 }
 0x41e   :  { %1300 = vmatprep.mubr.bf16.mxu0 %v900_v57 }
 0x425   :  { %1301 = vmatmul.mubr.bf16.gmra.mrb[28].mxu0 %v901_v54 }
 0x4e0   :  { %v1290_v59 = vpop.f32.mrb[16].mxu0 }
 0x4e1   :  { %1001 = vst [vmem:[#allocation5 + $0x10] sm:$0xff] %v1290_v59  ;;  %v936_v60 = vpop.f32.mrb[17].mxu0 }
 0x4e2   :  { %999 = vst [vmem:[#allocation5] sm:$0xff] %v936_v60  ;;  %v1291_v61 = vpop.f32.mrb[18].mxu0 }
 0x4e3   :  { %1002 = vst [vmem:[#allocation5 + $0x18] sm:$0xff] %v1291_v61  ;;  %v939_v62 = vpop.f32.mrb[19].mxu0 }
 0x4e4   :  { %1000 = vst [vmem:[#allocation5 + $0x8] sm:$0xff] %v939_v62 }
 0x4e8   :  { %v1294_v0 = vpop.f32.mrb[20].mxu0 }
 0x4e9   :  { %1005 = vst [vmem:[#allocation5 + $0x30] sm:$0xff] %v1294_v0  ;;  %v952_v1 = vpop.f32.mrb[21].mxu0 }
 0x4ea   :  { %1003 = vst [vmem:[#allocation5 + $0x20] sm:$0xff] %v952_v1  ;;  %v1295_v3 = vpop.f32.mrb[22].mxu0 }
 0x4eb   :  { %1006 = vst [vmem:[#allocation5 + $0x38] sm:$0xff] %v1295_v3  ;;  %v955_v22 = vpop.f32.mrb[23].mxu0 }
 0x4ec   :  { %1004 = vst [vmem:[#allocation5 + $0x28] sm:$0xff] %v955_v22 }
 0x4f0   :  { %v1298_v5 = vpop.f32.mrb[24].mxu0 }
 0x4f1   :  { %1009 = vst [vmem:[#allocation5 + $0x50] sm:$0xff] %v1298_v5  ;;  %v968_v63 = vpop.f32.mrb[25].mxu0 }
 0x4f2   :  { %1007 = vst [vmem:[#allocation5 + $0x40] sm:$0xff] %v968_v63  ;;  %v1299_v12 = vpop.f32.mrb[26].mxu0 }
 0x4f3   :  { %1010 = vst [vmem:[#allocation5 + $0x58] sm:$0xff] %v1299_v12  ;;  %v971_v19 = vpop.f32.mrb[27].mxu0 }
 0x4f4   :  { %1008 = vst [vmem:[#allocation5 + $0x48] sm:$0xff] %v971_v19 }
 0x4f8   :  { %v1302_v24 = vpop.f32.mrb[28].mxu0 }
 0x4f9   :  { %1013 = vst [vmem:[#allocation5 + $0x70] sm:$0xff] %v1302_v24  ;;  %v984_v15 = vpop.f32.mrb[29].mxu0 }
 0x4fa   :  { %1011 = vst [vmem:[#allocation5 + $0x60] sm:$0xff] %v984_v15  ;;  %v1303_v36 = vpop.f32.mrb[30].mxu0 }
 0x4fb   :  { %1014 = vst [vmem:[#allocation5 + $0x78] sm:$0xff] %v1303_v36  ;;  %v987_v4 = vpop.f32.mrb[31].mxu0 }
 0x4fc   :  { %1012 = vst [vmem:[#allocation5 + $0x68] sm:$0xff] %v987_v4 }
 0x4fd   :  { %1394 = shalt.err (!%p1391_p12)
}
 0x4fe   :  { %s1395_s18 = scalar_lea.hbm %s1749_s4, 2048 }
 0x4ff   :  { %p1396_p13 = scmp.ne.s32.totalorder %s1749_s4, %s1395_s18  ;;  %p1399_p0 = scmp.lt.u32.totalorder %s1395_s18, %s1749_s4 }
 0x501   :  { %p1401_p1 = pnand %p1399_p0, %p1396_p13 }
 0x503   :  { %1404 = shalt.err (!%p1401_p1)
}
 0x504   :  { %1026 = dma.vmem_to_hbm [thread:$0]  %s1021_s14, 2048, %s1749_s4, [#allocation4], %s1410_s25, %s1410_s25, %s1411_s26  }
 0x505   :  { %1407 = dma.done.wait [#allocation4], 2048  }
 0x506   :  { %1408 = vsyncadd [#allocation4], 4294965248 }
 0x507   :  { %1030 = vsyncpa [#allocation3], 1 }
 0x508   :  { %1031 = vsyncpa [#allocation4], 1 }

</bundles_post_ra>
